<compile_context>
chip_gen: v7x
topology: tpu7x:2x2x1
jax: 0.10.0
libtpu: 0.0.40
codegen_flags: <defaults>
</compile_context>

<pallas_src>
import functools
import math

import jax
import jax.numpy as jnp
import numpy as np
from jax import lax
from jax.experimental import pallas as pl
from jax.experimental.pallas import tpu as pltpu

_LANE = 128
_SUBLANE = 8
_VMEM_LIMIT_BYTES = 32 * 1024 * 1024   # safe on v5e/v6e/v7x, well above our tiles
_MAX_COL_TILE = 16 * 1024              # lane-dense column tile (multiple of 128)
_X_BLOCK_BYTES = 2 * 1024 * 1024       # ~2 MiB x-block per grid step


# ----------------------------------------------------------------------------
# Buffer setup (same math as the PyTorch __init__)
# ----------------------------------------------------------------------------
def make_pe(d_model: int, max_len: int) -> jnp.ndarray:
    position = jnp.arange(0.0, max_len, dtype=jnp.float32)[:, None]
    div_term = jnp.exp(
        jnp.arange(0.0, d_model, 2.0, dtype=jnp.float32)
        * -(math.log(10000.0) / d_model)
    )
    pe = jnp.zeros((max_len, d_model), dtype=jnp.float32)
    pe = pe.at[:, 0::2].set(jnp.sin(position * div_term))
    pe = pe.at[:, 1::2].set(jnp.cos(position * div_term))
    return pe                                        # (max_len, d_model)


# ----------------------------------------------------------------------------
# In-kernel helpers
# ----------------------------------------------------------------------------
def _fmix32(x):
    # murmur3 finalizer: good avalanche, only 32-bit mul/xor/shift (VPU-friendly,
    # lowers on TPU and in interpret mode).
    x = x ^ (x >> 16)
    x = x * jnp.uint32(0x7FEB352D)
    x = x ^ (x >> 15)
    x = x * jnp.uint32(0x846CA68B)
    x = x ^ (x >> 16)
    return x


def _dropout_mask(shape, row_idx_u32, col_idx_u32, seed_u32, p: float):
    # counter-based PRNG: bits depend only on (seed, global element index),
    # so the mask is identical for any tiling of the same tensor.
    bits = _fmix32(
        _fmix32(row_idx_u32 * jnp.uint32(0x9E3779B9) + seed_u32)
        ^ (col_idx_u32 * jnp.uint32(0x85EBCA6B))
    )
    # compare on 31 bits as int32 (portable unsigned-free compare);
    # keep-prob bias is <= 2^-31, negligible.
    bits31 = (bits >> 1).astype(jnp.int32)
    thresh = jnp.int32(min(int(p * (2.0 ** 31)), 2 ** 31 - 1))
    return bits31 >= thresh


# ----------------------------------------------------------------------------
# Kernels
# ----------------------------------------------------------------------------
def _pe_add_kernel(x_ref, pe_ref, o_ref):
    # eval mode: dropout is identity; pe broadcasts over the leading dim(s).
    o_ref[...] = x_ref[...] + pe_ref[...]


def _pe_add_dropout2d_kernel(seed_ref, x_ref, pe_ref, o_ref, *, p, tb, tc):
    # lane-dense path: x block (tb, tc) of the (B, S*D) view, pe block (1, tc).
    y = x_ref[...] + pe_ref[...]
    row_off = pl.program_id(0) * tb
    col_off = pl.program_id(1) * tc
    r = (lax.broadcasted_iota(jnp.int32, y.shape, 0) + row_off).astype(jnp.uint32)
    c = (lax.broadcasted_iota(jnp.int32, y.shape, 1) + col_off).astype(jnp.uint32)
    seed = seed_ref[0].astype(jnp.uint32)
    keep = _dropout_mask(y.shape, r, c, seed, p)
    scale = jnp.float32(1.0 / (1.0 - p))
    o_ref[...] = jnp.where(keep, y * scale, 0.0).astype(o_ref.dtype)


def _pe_add_dropout3d_kernel(seed_ref, x_ref, pe_ref, o_ref, *, p, seq_len):
    # fallback path: whole (B, S, D) block, pe block (S, D).
    y = x_ref[...] + pe_ref[...]
    b = lax.broadcasted_iota(jnp.int32, y.shape, 0)
    s = lax.broadcasted_iota(jnp.int32, y.shape, 1)
    d = lax.broadcasted_iota(jnp.int32, y.shape, 2)
    row = (b * seq_len + s).astype(jnp.uint32)
    col = d.astype(jnp.uint32)
    seed = seed_ref[0].astype(jnp.uint32)
    keep = _dropout_mask(y.shape, row, col, seed, p)
    scale = jnp.float32(1.0 / (1.0 - p))
    o_ref[...] = jnp.where(keep, y * scale, 0.0).astype(o_ref.dtype)


# ----------------------------------------------------------------------------
# Wrapper
# ----------------------------------------------------------------------------
def positional_encoding(x, pe, *, dropout_p: float = 0.1,
                        training: bool = False, seed: int = 0):
    """x: (B, S, D) float32, pe: (max_len, D) float32."""
    B, S, D = x.shape
    max_len, D_pe = pe.shape
    assert D_pe == D and S <= max_len

    use_dropout = training and dropout_p > 0.0
    if use_dropout:
        assert 0.0 < dropout_p < 1.0, "dropout_p must be in (0, 1) for training"

    compiler_params = pltpu.CompilerParams(
        dimension_semantics=("parallel", "parallel"),
        vmem_limit_bytes=_VMEM_LIMIT_BYTES)

    cols = S * D
    if cols % _LANE == 0:
        # -------- lane-dense fast path: flatten to (B, S*D) / (1, max_len*D) ----
        x2 = x.reshape(B, cols)                   # free contiguous reshape
        pe2 = pe.reshape(1, max_len * D)          # free; no pe[:S] slice copy

        tc = min(cols, _MAX_COL_TILE)
        tc = max(_LANE, (tc // _LANE) * _LANE)    # multiple of 128
        max_rows = max(1, _X_BLOCK_BYTES // (tc * x.dtype.itemsize))
        if max_rows >= B:
            tb = B                                # full dim -> always legal
        else:
            tb = max(_SUBLANE, (max_rows // _SUBLANE) * _SUBLANE)
        grid = (pl.cdiv(B, tb), pl.cdiv(cols, tc))

        x_spec = pl.BlockSpec((tb, tc), lambda i, j, *_: (i, j))
        pe_spec = pl.BlockSpec((1, tc), lambda i, j, *_: (0, j))   # resident over rows
        out_spec = pl.BlockSpec((tb, tc), lambda i, j, *_: (i, j))
        out_shape = jax.ShapeDtypeStruct((B, cols), x.dtype)

        if not use_dropout:
            out2 = pl.pallas_call(
                _pe_add_kernel,
                out_shape=out_shape,
                grid_spec=pltpu.PrefetchScalarGridSpec(
                    num_scalar_prefetch=0, grid=grid,
                    in_specs=[x_spec, pe_spec], out_specs=out_spec),
                compiler_params=compiler_params,
            )(x2, pe2)
        else:
            seed_arr = jnp.asarray([seed], dtype=jnp.int32)
            kernel = functools.partial(_pe_add_dropout2d_kernel,
                                       p=float(dropout_p), tb=tb, tc=tc)
            out2 = pl.pallas_call(
                kernel,
                out_shape=out_shape,
                grid_spec=pltpu.PrefetchScalarGridSpec(
                    num_scalar_prefetch=1, grid=grid,
                    in_specs=[x_spec, pe_spec], out_specs=out_spec),
                compiler_params=compiler_params,
            )(seed_arr, x2, pe2)
        return out2.reshape(B, S, D)

    # -------- fallback (S*D not a multiple of 128): single full-array block ----
    pe_s = pe[:S, :]   # small slice copy; only taken on this rare fallback path
    fb_params = pltpu.CompilerParams(
        dimension_semantics=("parallel",), vmem_limit_bytes=_VMEM_LIMIT_BYTES)
    x_spec = pl.BlockSpec((B, S, D), lambda *_: (0, 0, 0))
    pe_spec = pl.BlockSpec((S, D), lambda *_: (0, 0))
    out_spec = pl.BlockSpec((B, S, D), lambda *_: (0, 0, 0))
    out_shape = jax.ShapeDtypeStruct((B, S, D), x.dtype)

    if not use_dropout:
        return pl.pallas_call(
            _pe_add_kernel,
            out_shape=out_shape,
            grid_spec=pltpu.PrefetchScalarGridSpec(
                num_scalar_prefetch=0, grid=(1,),
                in_specs=[x_spec, pe_spec], out_specs=out_spec),
            compiler_params=fb_params,
        )(x, pe_s)

    seed_arr = jnp.asarray([seed], dtype=jnp.int32)
    kernel = functools.partial(_pe_add_dropout3d_kernel,
                               p=float(dropout_p), seq_len=S)
    return pl.pallas_call(
        kernel,
        out_shape=out_shape,
        grid_spec=pltpu.PrefetchScalarGridSpec(
            num_scalar_prefetch=1, grid=(1,),
            in_specs=[x_spec, pe_spec], out_specs=out_spec),
        compiler_params=fb_params,
    )(seed_arr, x, pe_s)


# ----------------------------------------------------------------------------
# Main
# ----------------------------------------------------------------------------
if __name__ == "__main__":
    d_model = 32
    max_len = 64          # module default is 5000; same math, smaller buffer
    dropout_p = 0.1
    B, S = 2, 8

    key = jax.random.PRNGKey(0)
    x = jax.random.normal(key, (B, S, d_model), dtype=jnp.float32)
    pe = make_pe(d_model, max_len)

    # eval-mode forward (deterministic) -- verify against pure-JAX reference
    out_eval = positional_encoding(x, pe, dropout_p=dropout_p, training=False)
    out_eval = jax.block_until_ready(out_eval)
    ref = np.asarray(x) + np.asarray(pe[:S, :])[None, :, :]
    np.testing.assert_allclose(np.asarray(out_eval), ref, rtol=1e-6, atol=1e-6)

    # training-mode forward (inverted dropout via in-kernel counter-based hash)
    out_train = positional_encoding(x, pe, dropout_p=dropout_p,
                                    training=True, seed=1234)
    out_train = jax.block_until_ready(out_train)
    assert out_train.shape == (B, S, d_model)
    y = np.asarray(out_train)
    scaled = ref / (1.0 - dropout_p)
    ok = np.isclose(y, 0.0, atol=1e-6) | np.isclose(y, scaled, rtol=1e-5, atol=1e-6)
    assert ok.all(), "dropout output must be 0 or (x+pe)/(1-p) elementwise"

    print("KERNEL_OK")
</pallas_src>

<mosaic_0001>
module attributes {stable_mosaic.version = 11 : i64} {
  func.func @_pe_add_kernel(%arg0: i32, %arg1: i32, %arg2: memref<2x256xf32, #tpu.memory_space<vmem>>, %arg3: memref<1x256xf32, #tpu.memory_space<vmem>>, %arg4: memref<2x256xf32, #tpu.memory_space<vmem>>) attributes {dimension_semantics = [#tpu.dimension_semantics<parallel>, #tpu.dimension_semantics<parallel>], iteration_bounds = array<i64: 1, 1>, scalar_prefetch = 0 : i64, scratch_operands = 0 : i64, tpu.core_type = #tpu.core_type<tc>, window_params = [{transform_indices = @transform_0, window_bounds = array<i64: 2, 256>}, {transform_indices = @transform_1, window_bounds = array<i64: 1, 256>}, {transform_indices = @transform_2, window_bounds = array<i64: 2, 256>}]} {
    %c0 = arith.constant 0 : index
    %c0_0 = arith.constant 0 : index
    %0 = vector.load %arg2[%c0, %c0_0] : memref<2x256xf32, #tpu.memory_space<vmem>>, vector<2x256xf32>
    %c0_1 = arith.constant 0 : index
    %c0_2 = arith.constant 0 : index
    %1 = vector.load %arg3[%c0_1, %c0_2] : memref<1x256xf32, #tpu.memory_space<vmem>>, vector<1x256xf32>
    %2 = vector.broadcast %1 : vector<1x256xf32> to vector<2x256xf32>
    %3 = arith.addf %0, %2 : vector<2x256xf32>
    %c0_3 = arith.constant 0 : index
    %c0_4 = arith.constant 0 : index
    %4 = vector.load %arg4[%c0_3, %c0_4] : memref<2x256xf32, #tpu.memory_space<vmem>>, vector<2x256xf32>
    tpu.vector_store %arg4[%c0_3, %c0_4], %3 {strides = array<i32>} : memref<2x256xf32, #tpu.memory_space<vmem>>, vector<2x256xf32>,
    return
  }
  func.func @transform_0(%arg0: i32, %arg1: i32) -> (i32, i32) {
    %c0_i32 = arith.constant 0 : i32
    return %arg0, %arg1 : i32, i32
  }
  func.func @transform_1(%arg0: i32, %arg1: i32) -> (i32, i32) {
    %c0_i32 = arith.constant 0 : i32
    %c0_i32_0 = arith.constant 0 : i32
    return %c0_i32, %arg1 : i32, i32
  }
  func.func @transform_2(%arg0: i32, %arg1: i32) -> (i32, i32) {
    %c0_i32 = arith.constant 0 : i32
    return %arg0, %arg1 : i32, i32
  }
}

</mosaic_0001>

<bundles_post_ra>
// kernel: tpu_custom_call.1
= control target key start
LH: loop header
LB: loop body
LE: loop exit
PB: predicated region body
PF: predicated region fallthrough
CT: control target
= control target key end

     0   :  { %7 = vsyncpa [#allocation3], 0  ;;  %s215_s0 = inlined_call_operand.hbm [shape: f32[2,256], index: 0, kind: input, shape index: {}]   ;;  %s216_s1 = inlined_call_operand.hbm [shape: f32[1,2048], index: 1, kind: input, shape index: {}]   ;;  %s217_s2 = inlined_call_operand.hbm [shape: f32[2,256], index: 2, kind: output, shape index: {}]  }
   0x1   :  { %8 = vsyncpa [#allocation6], 0 }
   0x2   :  { %9 = vsyncpa [#allocation4], 0  ;;  %s150_s9 = smov [#allocation2]   ;;  %s151_s11 = smov [#allocation5]  }
   0x3   :  { %s16_s10 = sshll.u32 %s150_s9, 4  ;;  %s26_s12 = sshll.u32 %s151_s11, 4  ;;  %s17_s10 = int_to_ptr.vmem [resolvable:$true] %s16_s10  ;;  %s169_s12 = int_to_ptr.vmem [resolvable:$true] %s26_s12 }
   0x4   :  { %s78_s15 = scalar_lea.hbm %s215_s0, 64 }
   0x5   :  { %p79_p0 = scmp.ne.s32.totalorder %s215_s0, %s78_s15  ;;  %p82_p1 = scmp.lt.u32.totalorder %s78_s15, %s215_s0 }
   0x7   :  { %p84_p2 = pnand %p82_p1, %p79_p0 }
   0x9   :  { %87 = shalt.err (!%p84_p2)
}
   0xa   :  { %s88_s20 = scalar_lea.vmem %s17_s10, 64  ;;  %p93_p4 = scmp.lt.s32.totalorder %s17_s10, %s17_s10 }
   0xb   :  { %p89_p3 = scmp.ne.s32.totalorder %s17_s10, %s88_s20  ;;  %p94_p5 = scmp.lt.s32.totalorder %s88_s20, %s88_s20 }
   0xd   :  { %p95_p6 = por %p94_p5, %p93_p4 }
   0xf   :  { %p96_p7 = pnand %p95_p6, %p89_p3 }
  0x11   :  { %99 = shalt.err (!%p96_p7)
}
  0x12   :  { %19 = dma.hbm_to_vmem [thread:$0]  %s215_s0, 64, %s17_s10, [#allocation3]  }
  0x13   :  { %s100_s25 = scalar_lea.hbm %s216_s1, 32  ;;  %s102_s30 = scalar_lea.hbm %s216_s1, 256 }
  0x14   :  { %p101_p8 = scmp.ne.s32.totalorder %s216_s1, %s100_s25  ;;  %p103_p9 = scmp.lt.u32.totalorder %s102_s30, %s100_s25 }
  0x15   :  { %p104_p10 = scmp.lt.u32.totalorder %s100_s25, %s216_s1 }
  0x17   :  { %p105_p11 = por %p104_p10, %p103_p9 }
  0x19   :  { %p106_p12 = pnand %p105_p11, %p101_p8 }
  0x1b   :  { %109 = shalt.err (!%p106_p12)
}
  0x1c   :  { %s110_s0 = scalar_lea.vmem %s169_s12, 32  ;;  %p115_p0 = scmp.lt.s32.totalorder %s169_s12, %s169_s12 }
  0x1d   :  { %p111_p13 = scmp.ne.s32.totalorder %s169_s12, %s110_s0  ;;  %p116_p1 = scmp.lt.s32.totalorder %s110_s0, %s110_s0 }
  0x1f   :  { %p117_p2 = por %p116_p1, %p115_p0 }
  0x21   :  { %p118_p3 = pnand %p117_p2, %p111_p13 }
  0x23   :  { %121 = shalt.err (!%p118_p3)
}
  0x24   :  { %29 = dma.hbm_to_vmem [thread:$0]  %s216_s1, 32, %s169_s12, [#allocation6]  }
  0x25   :  { %144 = dma.done.wait [#allocation3], 64  }
  0x26   :  { %145 = vsyncadd [#allocation3], 4294967232 }
  0x27   :  { %146 = dma.done.wait [#allocation6], 32  }
  0x28   :  { %147 = vsyncadd [#allocation6], 4294967264  ;;  %v39_v0 = vlaneseq  ;;  %v152_v1 = vmov 1983009808   ;;  %v37_v7 = vld [vmem:[#allocation5] sm:$0x3] }
  0x29   :  { %v49_v2 = vunpack.c.l.s4 %v152_v1  ;;  %v36_v12 = vld [vmem:[#allocation2] sm:$0xf]  ;;  %s153_s7 = smov [#allocation7]  }
  0x2a   :  { %v40_v3 = vshrl.u32 %v39_v0, 7  ;;  %s64_s8 = sshll.u32 %s153_s7, 4  ;;  %s65_s8 = int_to_ptr.vmem [resolvable:$true] %s64_s8 }
  0x2b   :  { %v50_v6 = vunpack.c.0.s8 %v49_v2  ;;  %s122_s1 = scalar_lea.vmem %s65_s8, 64  ;;  %p127_p5 = scmp.lt.s32.totalorder %s65_s8, %s65_s8 }
  0x2c   :  { %v41_v4 = vsub.s32 0, %v40_v3  ;;  %v45_v5 = vsub.s32 1, %v40_v3  ;;  %p123_p4 = scmp.ne.s32.totalorder %s65_s8, %s122_s1  ;;  %p128_p6 = scmp.lt.s32.totalorder %s122_s1, %s122_s1 }
  0x2d   :  { %v53_v10 = vsub.s32 %v50_v6, %v40_v3 }
  0x2e   :  { %v42_v8 = vrot.slane %v37_v7, %v41_v4  ;;  %v46_v9 = vrot.slane %v37_v7, %v45_v5  ;;  %p129_p7 = por %p128_p6, %p127_p5 }
  0x30   :  { %v47_v11 = vcombine.low %v42_v8, %v46_v9  ;;  %p130_p8 = pnand %p129_p7, %p123_p4 }
  0x32   :  { %v54_v13 = vrot.slane %v47_v11, %v53_v10 }
  0x34   :  { %v56_v14 = vadd.f32 %v54_v13, %v36_v12 }
  0x36   :  { %57 = vst [vmem:[#allocation7] sm:$0xf] %v56_v14 }
  0x37   :  { %133 = shalt.err (!%p130_p8)
}
  0x38   :  { %s134_s11 = scalar_lea.hbm %s217_s2, 64 }
  0x39   :  { %p135_p9 = scmp.ne.s32.totalorder %s217_s2, %s134_s11  ;;  %p138_p10 = scmp.lt.u32.totalorder %s134_s11, %s217_s2 }
  0x3b   :  { %p140_p11 = pnand %p138_p10, %p135_p9 }
  0x3d   :  { %143 = shalt.err (!%p140_p11)
}
  0x3e   :  { %67 = dma.vmem_to_hbm [thread:$0]  %s65_s8, 64, %s217_s2, [#allocation4]  }
  0x3f   :  { %148 = dma.done.wait [#allocation4], 64  }
  0x40   :  { %149 = vsyncadd [#allocation4], 4294967232 }
  0x41   :  { %71 = vsyncpa [#allocation3], 1 }
  0x42   :  { %72 = vsyncpa [#allocation6], 1 }
  0x43   :  { %73 = vsyncpa [#allocation4], 1 }

</bundles_post_ra>
